<compile_context>
chip_gen: v6e
topology: v6e:2x2x1
jax: 0.10.0
libtpu: 0.0.40
codegen_flags: <defaults>
</compile_context>

<pallas_src>
import math
import jax
import jax.numpy as jnp
from jax.experimental import pallas as pl
from jax.experimental.pallas import tpu as pltpu

# ---- small synthetic LlamaConfig ----
HIDDEN = 32          # config.hidden_size
N_HEADS = 4          # config.num_attention_heads
N_KV_HEADS = 2       # config.num_key_value_heads
HEAD_DIM = HIDDEN // N_HEADS          # 8
N_GROUPS = N_HEADS // N_KV_HEADS      # 2
KV_DIM = N_KV_HEADS * HEAD_DIM        # 16
INTER = 64           # config.intermediate_size
SEQ = 8
BATCH = 2
BS = BATCH * SEQ     # folded rows
EPS = 1e-6           # config.rms_norm_eps
ROPE_THETA = 10000.0
LORA_R = 16
LORA_ALPHA = 16


def decoder_layer_kernel(x_ref, mask_ref, cos_ref, sin_ref, bd_ref,
                         ln1_ref, ln2_ref,
                         wqkv_ref, wo_ref, wgu_ref, wd_ref,
                         out_ref):
    """Whole (batch-folded) decoder layer in one grid step. Everything in VMEM.

    x_ref    : (BS, H)            f32   hidden states, batch folded into rows
    mask_ref : (BS, N_HEADS*BS)   f32   additive mask, block-diag over batch,
                                        pre-tiled across heads
    cos_ref  : (BS, 2*H)          f32   RoPE cos, tiled per head for [q | k_rep]
    sin_ref  : (BS, 2*H)          f32
    bd_ref   : (N_HEADS*BS, H)    f32   0/1 head block-diagonal map
    wqkv_ref : (H, 5*H)           bf16  [Wq | Wk_rep | Wq@R | Wk_rep@R | Wv_rep]
    wo_ref   : (H, H)             bf16
    wgu_ref  : (H, 2*I)           bf16  [Wg | Wu]
    wd_ref   : (I, H)             bf16
    """
    bf16 = jnp.bfloat16
    x = x_ref[...]                                            # (BS, H) f32
    scale = 1.0 / math.sqrt(HEAD_DIM)

    # ---- input RMSNorm (f32) ----
    var = jnp.mean(x * x, axis=-1, keepdims=True)
    xn = x * jax.lax.rsqrt(var + EPS) * ln1_ref[...]          # (BS, H)

    # ---- fused QKV projection (LoRA merge, rotate_half and GQA repeat all
    #      folded into the weight) ----
    qkv = jnp.dot(xn.astype(bf16), wqkv_ref[...],
                  preferred_element_type=jnp.float32)         # (BS, 5*H)
    base = qkv[:, :2 * HIDDEN]                                # [q | k_rep]
    rot = qkv[:, 2 * HIDDEN:4 * HIDDEN]                       # [rh(q) | rh(k_rep)]
    v_rep = qkv[:, 4 * HIDDEN:]                               # (BS, H)

    # ---- RoPE for q and (repeated) k in one vectorized pass ----
    roped = base * cos_ref[...] + rot * sin_ref[...]          # (BS, 2*H) f32
    rq = roped[:, :HIDDEN]                                    # (BS, H)
    rk_rep = roped[:, HIDDEN:]                                # (BS, H)

    # ---- block-diagonal K / V for a single all-heads score / PV matmul ----
    bd = bd_ref[...]                                          # (N_HEADS*BS, H)
    k_bd = (jnp.concatenate([rk_rep] * N_HEADS, axis=0) * bd).astype(bf16)
    v_bd = (jnp.concatenate([v_rep] * N_HEADS, axis=0) * bd).astype(bf16)

    # scores for all heads: s[q, h*BS + k] = q_h(q) . k_{g(h)}(k)
    s = jax.lax.dot_general(rq.astype(bf16), k_bd,
                            (((1,), (1,)), ((), ())),
                            preferred_element_type=jnp.float32)   # (BS, 4*BS)
    s = s * scale + mask_ref[...]

    # Softmax with a single per-row max: the subtracted constant cancels inside
    # each head group, so the per-head softmax is exact.
    m = jnp.max(s, axis=-1, keepdims=True)
    p = jnp.exp(s - m)                                        # (BS, 4*BS) f32
    p_b = p.astype(bf16)

    # PV and per-head denominators (broadcast over each head's 8 columns) are
    # two independent matmuls off the same p.
    attn_un = jnp.dot(p_b, v_bd, preferred_element_type=jnp.float32)   # (BS, H)
    denom = jnp.dot(p_b, bd.astype(bf16), preferred_element_type=jnp.float32)
    attn = attn_un * pl.reciprocal(denom, approx=True)        # (BS, H) head-major

    # ---- o_proj + residual ----
    attn_out = jnp.dot(attn.astype(bf16), wo_ref[...],
                       preferred_element_type=jnp.float32)    # (BS, H)
    h1 = x + attn_out

    # ---- post-attention RMSNorm + fused SwiGLU MLP + residual ----
    var2 = jnp.mean(h1 * h1, axis=-1, keepdims=True)
    hn = h1 * jax.lax.rsqrt(var2 + EPS) * ln2_ref[...]
    gu = jnp.dot(hn.astype(bf16), wgu_ref[...],
                 preferred_element_type=jnp.float32)          # (BS, 2*I) = 128 lanes
    gate = gu[:, :INTER]
    up = gu[:, INTER:]
    act = jax.nn.silu(gate) * up                              # f32 elementwise
    mlp = jnp.dot(act.astype(bf16), wd_ref[...],
                  preferred_element_type=jnp.float32)         # (BS, H)

    out_ref[...] = h1 + mlp


@jax.jit
def decoder_layer(x, mask64, cos2, sin2, bd_map, ln1, ln2, wqkv, wo_t, wgu, wd_t):
    B, S, H = x.shape
    x2 = x.reshape(B * S, H)
    args = (x2, mask64, cos2, sin2, bd_map, ln1, ln2, wqkv, wo_t, wgu, wd_t)

    def cspec(shape):
        n = len(shape)
        return pl.BlockSpec(shape, lambda i, _n=n: (0,) * _n)

    out2 = pl.pallas_call(
        decoder_layer_kernel,
        out_shape=jax.ShapeDtypeStruct((B * S, H), x.dtype),
        grid_spec=pltpu.PrefetchScalarGridSpec(
            num_scalar_prefetch=0,
            grid=(1,),                                   # single step: batch folded
            in_specs=[cspec(a.shape) for a in args],
            out_specs=cspec((B * S, H)),
        ),
        compiler_params=pltpu.CompilerParams(dimension_semantics=("arbitrary",)),
    )(*args)
    return out2.reshape(B, S, H)


# ---------------- parameter / input construction (glue, plain JAX) ----------------

def merged_lora_linear(key, out_dim, in_dim):
    """lora.Linear(in, out, r=16, alpha=16): W_eff = W + (alpha/r) * B @ A.
    lora_dropout is a no-op at inference."""
    k1, k2, k3 = jax.random.split(key, 3)
    w = jax.random.normal(k1, (out_dim, in_dim), jnp.float32) * 0.02
    a = jax.random.normal(k2, (LORA_R, in_dim), jnp.float32) * 0.02
    b = jax.random.normal(k3, (out_dim, LORA_R), jnp.float32) * 0.02
    return w + (LORA_ALPHA / LORA_R) * (b @ a)


def make_rope(seq, dim):
    inv_freq = 1.0 / (ROPE_THETA ** (jnp.arange(0, dim, 2, dtype=jnp.float32) / dim))
    t = jnp.arange(seq, dtype=jnp.float32)
    freqs = jnp.outer(t, inv_freq)                      # (S, dim/2)
    emb = jnp.concatenate([freqs, freqs], axis=-1)      # (S, dim)
    return jnp.cos(emb), jnp.sin(emb)


def make_rot_matrix(n_heads, d):
    """Block-diagonal matrix R so that (q @ R) == rotate_half(q) per head."""
    d2 = d // 2
    blk = jnp.zeros((d, d), jnp.float32)
    blk = blk.at[d2:, :d2].set(-jnp.eye(d2, dtype=jnp.float32))   # out[:, :d2] = -q2
    blk = blk.at[:d2, d2:].set(jnp.eye(d2, dtype=jnp.float32))    # out[:, d2:] = +q1
    return jnp.kron(jnp.eye(n_heads, dtype=jnp.float32), blk)     # (n_heads*d,)^2


def reference_forward(x, mask, cos, sin, ln1, ln2, wq, wk, wv, wo, wg, wu, wd):
    """Pure-JAX f32 mirror of the PyTorch forward, for correctness checking."""
    def rms(t, w):
        v = jnp.mean(t * t, -1, keepdims=True)
        return t * jax.lax.rsqrt(v + EPS) * w

    B, S, _ = x.shape
    xn = rms(x, ln1)
    q = (xn @ wq.T).reshape(B, S, N_HEADS, HEAD_DIM).transpose(0, 2, 1, 3)
    k = (xn @ wk.T).reshape(B, S, N_KV_HEADS, HEAD_DIM).transpose(0, 2, 1, 3)
    v = (xn @ wv.T).reshape(B, S, N_KV_HEADS, HEAD_DIM).transpose(0, 2, 1, 3)

    def rot_half(t):
        return jnp.concatenate([-t[..., HEAD_DIM // 2:], t[..., :HEAD_DIM // 2]], -1)

    c, s = cos[None, None], sin[None, None]
    q = q * c + rot_half(q) * s
    k = k * c + rot_half(k) * s
    k = jnp.repeat(k, N_GROUPS, axis=1)
    v = jnp.repeat(v, N_GROUPS, axis=1)
    scores = jnp.einsum('bhqd,bhkd->bhqk', q, k) / math.sqrt(HEAD_DIM) + mask
    p = jax.nn.softmax(scores, -1)
    a = jnp.einsum('bhqk,bhkd->bhqd', p, v).transpose(0, 2, 1, 3).reshape(B, S, HIDDEN)
    h1 = x + a @ wo.T
    hn = rms(h1, ln2)
    mlp = (jax.nn.silu(hn @ wg.T) * (hn @ wu.T)) @ wd.T
    return h1 + mlp


if __name__ == "__main__":
    key = jax.random.PRNGKey(0)
    keys = jax.random.split(key, 10)

    # attention projections (LoRA-merged), shapes per LlamaAttentionForReg
    wq = merged_lora_linear(keys[0], N_HEADS * HEAD_DIM, HIDDEN)        # (32, 32)
    wk = merged_lora_linear(keys[1], KV_DIM, HIDDEN)                    # (16, 32)
    wv = merged_lora_linear(keys[2], KV_DIM, HIDDEN)                    # (16, 32)
    wo = merged_lora_linear(keys[3], HIDDEN, N_HEADS * HEAD_DIM)        # (32, 32)
    # LlamaMLP (plain Linear, no bias)
    wg = jax.random.normal(keys[4], (INTER, HIDDEN), jnp.float32) * 0.02
    wu = jax.random.normal(keys[5], (INTER, HIDDEN), jnp.float32) * 0.02
    wd = jax.random.normal(keys[6], (HIDDEN, INTER), jnp.float32) * 0.02
    # RMSNorm weights (HF init = ones)
    ln1 = jnp.ones((HIDDEN,), jnp.float32)
    ln2 = jnp.ones((HIDDEN,), jnp.float32)

    # inputs
    x = jax.random.normal(keys[7], (BATCH, SEQ, HIDDEN), jnp.float32)
    idx = jnp.arange(SEQ)
    causal = jnp.where(idx[None, :] <= idx[:, None], 0.0, -1e30).astype(jnp.float32)
    mask = jnp.broadcast_to(causal, (BATCH, 1, SEQ, SEQ))
    cos, sin = make_rope(SEQ, HEAD_DIM)

    # --- wrapper-side fusion / pre-tiling (layout plumbing, no compute moved) ---
    bf16 = jnp.bfloat16
    R = make_rot_matrix(N_HEADS, HEAD_DIM)                              # (32, 32)
    wq_t = wq.T                                                         # (32, 32)
    wk_t = wk.T                                                         # (32, 16)
    wv_t = wv.T                                                         # (32, 16)
    # GQA repeat folded into the weights: each kv head's 8 output cols duplicated
    # once per query head that shares it (head-major ordering).
    wk_rep = jnp.concatenate(
        [wk_t[:, (h // N_GROUPS) * HEAD_DIM:(h // N_GROUPS + 1) * HEAD_DIM]
         for h in range(N_HEADS)], axis=1)                              # (32, 32)
    wv_rep = jnp.concatenate(
        [wv_t[:, (h // N_GROUPS) * HEAD_DIM:(h // N_GROUPS + 1) * HEAD_DIM]
         for h in range(N_HEADS)], axis=1)                              # (32, 32)
    # [q | k_rep | rotate_half(q) | rotate_half(k_rep) | v_rep]
    wqkv_ext = jnp.concatenate(
        [wq_t, wk_rep, wq_t @ R, wk_rep @ R, wv_rep], axis=1).astype(bf16)  # (32, 160)
    wgu = jnp.concatenate([wg.T, wu.T], axis=1).astype(bf16)            # (32, 128)
    wo_t = wo.T.astype(bf16)                                            # (32, 32)
    wd_t = wd.T.astype(bf16)                                            # (64, 32)

    # RoPE cos/sin tiled per head for the [q | k_rep] columns, batch folded: row r
    # uses position r % SEQ.
    cos2 = jnp.tile(cos, (BATCH, 2 * N_HEADS))                          # (16, 64)
    sin2 = jnp.tile(sin, (BATCH, 2 * N_HEADS))                          # (16, 64)

    # Fold the external (B,1,S,S) attention mask into a block-diagonal (BS,BS)
    # additive mask (cross-batch = -1e30), then tile across heads.
    mask_bd = jnp.full((BS, BS), -1e30, jnp.float32)
    for b in range(BATCH):
        mask_bd = mask_bd.at[b * SEQ:(b + 1) * SEQ, b * SEQ:(b + 1) * SEQ].set(mask[b, 0])
    mask64 = jnp.tile(mask_bd, (1, N_HEADS))                            # (16, 64)

    # 0/1 head block-diagonal map (shared by K/V block-diag build + denominators).
    row_head = jnp.arange(N_HEADS * BS) // BS
    col_head = jnp.arange(HIDDEN) // HEAD_DIM
    bd_map = (row_head[:, None] == col_head[None, :]).astype(jnp.float32)  # (64, 32)

    out = decoder_layer(
        x, mask64, cos2, sin2, bd_map,
        ln1.reshape(1, HIDDEN), ln2.reshape(1, HIDDEN),
        wqkv_ext, wo_t, wgu, wd_t)
    out = jax.block_until_ready(out)

    ref = reference_forward(x, mask, cos, sin, ln1, ln2, wq, wk, wv, wo, wg, wu, wd)
    err = float(jnp.max(jnp.abs(out - ref)))
    assert out.shape == (BATCH, SEQ, HIDDEN)
    # bf16 MXU inputs + approx reciprocal vs. an f32 reference: allow 2e-2 abs.
    assert err < 2e-2, f"max abs error {err}"

    # TODO(synk): past_key_value / use_cache and output_attentions paths are not
    # exercised (forward is called with defaults), so they are not implemented.
    print("KERNEL_OK")
</pallas_src>

<mosaic_0001>
module attributes {stable_mosaic.version = 11 : i64} {
  func.func @decoder_layer_kernel(%arg0: i32, %arg1: memref<16x32xf32, #tpu.memory_space<vmem>>, %arg2: memref<16x64xf32, #tpu.memory_space<vmem>>, %arg3: memref<16x64xf32, #tpu.memory_space<vmem>>, %arg4: memref<16x64xf32, #tpu.memory_space<vmem>>, %arg5: memref<64x32xf32, #tpu.memory_space<vmem>>, %arg6: memref<1x32xf32, #tpu.memory_space<vmem>>, %arg7: memref<1x32xf32, #tpu.memory_space<vmem>>, %arg8: memref<32x160xbf16, #tpu.memory_space<vmem>>, %arg9: memref<32x32xbf16, #tpu.memory_space<vmem>>, %arg10: memref<32x128xbf16, #tpu.memory_space<vmem>>, %arg11: memref<64x32xbf16, #tpu.memory_space<vmem>>, %arg12: memref<16x32xf32, #tpu.memory_space<vmem>>) attributes {dimension_semantics = [#tpu.dimension_semantics<arbitrary>], iteration_bounds = array<i64: 1>, scalar_prefetch = 0 : i64, scratch_operands = 0 : i64, tpu.core_type = #tpu.core_type<tc>, window_params = [{pipeline_mode = #tpu.pipeline_mode<synchronous>, transform_indices = @transform_0, window_bounds = array<i64: 16, 32>}, {pipeline_mode = #tpu.pipeline_mode<synchronous>, transform_indices = @transform_1, window_bounds = array<i64: 16, 64>}, {pipeline_mode = #tpu.pipeline_mode<synchronous>, transform_indices = @transform_2, window_bounds = array<i64: 16, 64>}, {pipeline_mode = #tpu.pipeline_mode<synchronous>, transform_indices = @transform_3, window_bounds = array<i64: 16, 64>}, {pipeline_mode = #tpu.pipeline_mode<synchronous>, transform_indices = @transform_4, window_bounds = array<i64: 64, 32>}, {pipeline_mode = #tpu.pipeline_mode<synchronous>, transform_indices = @transform_5, window_bounds = array<i64: 1, 32>}, {pipeline_mode = #tpu.pipeline_mode<synchronous>, transform_indices = @transform_6, window_bounds = array<i64: 1, 32>}, {pipeline_mode = #tpu.pipeline_mode<synchronous>, transform_indices = @transform_7, window_bounds = array<i64: 32, 160>}, {pipeline_mode = #tpu.pipeline_mode<synchronous>, transform_indices = @transform_8, window_bounds = array<i64: 32, 32>}, {pipeline_mode = #tpu.pipeline_mode<synchronous>, transform_indices = @transform_9, window_bounds = array<i64: 32, 128>}, {pipeline_mode = #tpu.pipeline_mode<synchronous>, transform_indices = @transform_10, window_bounds = array<i64: 64, 32>}, {pipeline_mode = #tpu.pipeline_mode<synchronous>, transform_indices = @transform_11, window_bounds = array<i64: 16, 32>}]} {
    %c0 = arith.constant 0 : index
    %c0_0 = arith.constant 0 : index
    %0 = vector.load %arg1[%c0, %c0_0] : memref<16x32xf32, #tpu.memory_space<vmem>>, vector<16x32xf32>
    %1 = arith.mulf %0, %0 : vector<16x32xf32>
    %cst = arith.constant dense<0.000000e+00> : vector<16xf32>
    %2 = vector.multi_reduction <add>, %1, %cst [1] : vector<16x32xf32> to vector<16xf32>
    %3 = vector.shape_cast %2 : vector<16xf32> to vector<16x1xf32>
    %cst_1 = arith.constant 3.200000e+01 : f32
    %4 = vector.broadcast %cst_1 : f32 to vector<16x1xf32>
    %5 = arith.divf %3, %4 : vector<16x1xf32>
    %cst_2 = arith.constant 9.99999997E-7 : f32
    %6 = vector.broadcast %cst_2 : f32 to vector<16x1xf32>
    %7 = arith.addf %5, %6 : vector<16x1xf32>
    %8 = math.rsqrt %7 : vector<16x1xf32>
    %9 = vector.broadcast %8 : vector<16x1xf32> to vector<16x32xf32>
    %10 = arith.mulf %0, %9 : vector<16x32xf32>
    %c0_3 = arith.constant 0 : index
    %c0_4 = arith.constant 0 : index
    %11 = vector.load %arg6[%c0_3, %c0_4] : memref<1x32xf32, #tpu.memory_space<vmem>>, vector<1x32xf32>
    %12 = vector.broadcast %11 : vector<1x32xf32> to vector<16x32xf32>
    %13 = arith.mulf %10, %12 : vector<16x32xf32>
    %14 = arith.truncf %13 : vector<16x32xf32> to vector<16x32xbf16>
    %c0_5 = arith.constant 0 : index
    %c0_6 = arith.constant 0 : index
    %15 = vector.load %arg8[%c0_5, %c0_6] : memref<32x160xbf16, #tpu.memory_space<vmem>>, vector<32x160xbf16>
    %cst_7 = arith.constant dense<0.000000e+00> : vector<16x160xf32>
    %16 = tpu.matmul %14, %15, %cst_7 {dimension_numbers = #tpu.dot_dimension_numbers<[1], [0], [0], [1], [0, 0, 1, 1], [], []>} : vector<16x32xbf16>, vector<32x160xbf16>, vector<16x160xf32> -> vector<16x160xf32>
    %17 = vector.extract_strided_slice %16 {offsets = [0, 0], sizes = [16, 64], strides = [1, 1]} : vector<16x160xf32> to vector<16x64xf32>
    %18 = vector.extract_strided_slice %16 {offsets = [0, 64], sizes = [16, 64], strides = [1, 1]} : vector<16x160xf32> to vector<16x64xf32>
    %19 = vector.extract_strided_slice %16 {offsets = [0, 128], sizes = [16, 32], strides = [1, 1]} : vector<16x160xf32> to vector<16x32xf32>
    %c0_8 = arith.constant 0 : index
    %c0_9 = arith.constant 0 : index
    %20 = vector.load %arg3[%c0_8, %c0_9] : memref<16x64xf32, #tpu.memory_space<vmem>>, vector<16x64xf32>
    %21 = arith.mulf %17, %20 : vector<16x64xf32>
    %c0_10 = arith.constant 0 : index
    %c0_11 = arith.constant 0 : index
    %22 = vector.load %arg4[%c0_10, %c0_11] : memref<16x64xf32, #tpu.memory_space<vmem>>, vector<16x64xf32>
    %23 = arith.mulf %18, %22 : vector<16x64xf32>
    %24 = arith.addf %21, %23 : vector<16x64xf32>
    %25 = vector.extract_strided_slice %24 {offsets = [0, 0], sizes = [16, 32], strides = [1, 1]} : vector<16x64xf32> to vector<16x32xf32>
    %26 = vector.extract_strided_slice %24 {offsets = [0, 32], sizes = [16, 32], strides = [1, 1]} : vector<16x64xf32> to vector<16x32xf32>
    %c0_12 = arith.constant 0 : index
    %c0_13 = arith.constant 0 : index
    %27 = vector.load %arg5[%c0_12, %c0_13] : memref<64x32xf32, #tpu.memory_space<vmem>>, vector<64x32xf32>
    %28 = tpu.concatenate %26, %26, %26, %26 in 0 : vector<16x32xf32>, vector<16x32xf32>, vector<16x32xf32>, vector<16x32xf32> -> vector<64x32xf32>
    %29 = arith.mulf %28, %27 : vector<64x32xf32>
    %30 = arith.truncf %29 : vector<64x32xf32> to vector<64x32xbf16>
    %31 = tpu.concatenate %19, %19, %19, %19 in 0 : vector<16x32xf32>, vector<16x32xf32>, vector<16x32xf32>, vector<16x32xf32> -> vector<64x32xf32>
    %32 = arith.mulf %31, %27 : vector<64x32xf32>
    %33 = arith.truncf %32 : vector<64x32xf32> to vector<64x32xbf16>
    %34 = arith.truncf %25 : vector<16x32xf32> to vector<16x32xbf16>
    %cst_14 = arith.constant dense<0.000000e+00> : vector<16x64xf32>
    %35 = tpu.matmul %34, %30, %cst_14 {dimension_numbers = #tpu.dot_dimension_numbers<[1], [1], [0], [0], [0, 0, 1, 0], [], []>} : vector<16x32xbf16>, vector<64x32xbf16>, vector<16x64xf32> -> vector<16x64xf32>
    %cst_15 = arith.constant 0.353553385 : f32
    %36 = vector.broadcast %cst_15 : f32 to vector<16x64xf32>
    %37 = arith.mulf %35, %36 : vector<16x64xf32>
    %c0_16 = arith.constant 0 : index
    %c0_17 = arith.constant 0 : index
    %38 = vector.load %arg2[%c0_16, %c0_17] : memref<16x64xf32, #tpu.memory_space<vmem>>, vector<16x64xf32>
    %39 = arith.addf %37, %38 : vector<16x64xf32>
    %cst_18 = arith.constant dense<0xFF800000> : vector<16xf32>
    %40 = vector.multi_reduction <maximumf>, %39, %cst_18 [1] : vector<16x64xf32> to vector<16xf32>
    %41 = vector.shape_cast %40 : vector<16xf32> to vector<16x1xf32>
    %42 = vector.broadcast %41 : vector<16x1xf32> to vector<16x64xf32>
    %43 = arith.subf %39, %42 : vector<16x64xf32>
    %44 = math.exp %43 : vector<16x64xf32>
    %45 = arith.truncf %44 : vector<16x64xf32> to vector<16x64xbf16>
    %cst_19 = arith.constant dense<0.000000e+00> : vector<16x32xf32>
    %46 = tpu.matmul %45, %33, %cst_19 {dimension_numbers = #tpu.dot_dimension_numbers<[1], [0], [0], [1], [0, 0, 1, 1], [], []>} : vector<16x64xbf16>, vector<64x32xbf16>, vector<16x32xf32> -> vector<16x32xf32>
    %47 = arith.truncf %27 : vector<64x32xf32> to vector<64x32xbf16>
    %cst_20 = arith.constant dense<0.000000e+00> : vector<16x32xf32>
    %48 = tpu.matmul %45, %47, %cst_20 {dimension_numbers = #tpu.dot_dimension_numbers<[1], [0], [0], [1], [0, 0, 1, 1], [], []>} : vector<16x64xbf16>, vector<64x32xbf16>, vector<16x32xf32> -> vector<16x32xf32>
    %49 = tpu.reciprocal %48 {approx = true} : vector<16x32xf32> -> vector<16x32xf32>
    %50 = arith.mulf %46, %49 : vector<16x32xf32>
    %51 = arith.truncf %50 : vector<16x32xf32> to vector<16x32xbf16>
    %c0_21 = arith.constant 0 : index
    %c0_22 = arith.constant 0 : index
    %52 = vector.load %arg9[%c0_21, %c0_22] : memref<32x32xbf16, #tpu.memory_space<vmem>>, vector<32x32xbf16>
    %cst_23 = arith.constant dense<0.000000e+00> : vector<16x32xf32>
    %53 = tpu.matmul %51, %52, %cst_23 {dimension_numbers = #tpu.dot_dimension_numbers<[1], [0], [0], [1], [0, 0, 1, 1], [], []>} : vector<16x32xbf16>, vector<32x32xbf16>, vector<16x32xf32> -> vector<16x32xf32>
    %54 = arith.addf %0, %53 : vector<16x32xf32>
    %55 = arith.mulf %54, %54 : vector<16x32xf32>
    %cst_24 = arith.constant dense<0.000000e+00> : vector<16xf32>
    %56 = vector.multi_reduction <add>, %55, %cst_24 [1] : vector<16x32xf32> to vector<16xf32>
    %57 = vector.shape_cast %56 : vector<16xf32> to vector<16x1xf32>
    %cst_25 = arith.constant 3.200000e+01 : f32
    %58 = vector.broadcast %cst_25 : f32 to vector<16x1xf32>
    %59 = arith.divf %57, %58 : vector<16x1xf32>
    %cst_26 = arith.constant 9.99999997E-7 : f32
    %60 = vector.broadcast %cst_26 : f32 to vector<16x1xf32>
    %61 = arith.addf %59, %60 : vector<16x1xf32>
    %62 = math.rsqrt %61 : vector<16x1xf32>
    %63 = vector.broadcast %62 : vector<16x1xf32> to vector<16x32xf32>
    %64 = arith.mulf %54, %63 : vector<16x32xf32>
    %c0_27 = arith.constant 0 : index
    %c0_28 = arith.constant 0 : index
    %65 = vector.load %arg7[%c0_27, %c0_28] : memref<1x32xf32, #tpu.memory_space<vmem>>, vector<1x32xf32>
    %66 = vector.broadcast %65 : vector<1x32xf32> to vector<16x32xf32>
    %67 = arith.mulf %64, %66 : vector<16x32xf32>
    %68 = arith.truncf %67 : vector<16x32xf32> to vector<16x32xbf16>
    %c0_29 = arith.constant 0 : index
    %c0_30 = arith.constant 0 : index
    %69 = vector.load %arg10[%c0_29, %c0_30] : memref<32x128xbf16, #tpu.memory_space<vmem>>, vector<32x128xbf16>
    %cst_31 = arith.constant dense<0.000000e+00> : vector<16x128xf32>
    %70 = tpu.matmul %68, %69, %cst_31 {dimension_numbers = #tpu.dot_dimension_numbers<[1], [0], [0], [1], [0, 0, 1, 1], [], []>} : vector<16x32xbf16>, vector<32x128xbf16>, vector<16x128xf32> -> vector<16x128xf32>
    %71 = vector.extract_strided_slice %70 {offsets = [0, 0], sizes = [16, 64], strides = [1, 1]} : vector<16x128xf32> to vector<16x64xf32>
    %72 = vector.extract_strided_slice %70 {offsets = [0, 64], sizes = [16, 64], strides = [1, 1]} : vector<16x128xf32> to vector<16x64xf32>
    %73 = arith.negf %71 : vector<16x64xf32>
    %74 = math.exp %73 : vector<16x64xf32>
    %cst_32 = arith.constant 1.000000e+00 : f32
    %75 = vector.broadcast %cst_32 : f32 to vector<16x64xf32>
    %76 = arith.addf %75, %74 : vector<16x64xf32>
    %77 = arith.divf %75, %76 : vector<16x64xf32>
    %78 = arith.mulf %71, %77 : vector<16x64xf32>
    %79 = arith.mulf %78, %72 : vector<16x64xf32>
    %80 = arith.truncf %79 : vector<16x64xf32> to vector<16x64xbf16>
    %c0_33 = arith.constant 0 : index
    %c0_34 = arith.constant 0 : index
    %81 = vector.load %arg11[%c0_33, %c0_34] : memref<64x32xbf16, #tpu.memory_space<vmem>>, vector<64x32xbf16>
    %cst_35 = arith.constant dense<0.000000e+00> : vector<16x32xf32>
    %82 = tpu.matmul %80, %81, %cst_35 {dimension_numbers = #tpu.dot_dimension_numbers<[1], [0], [0], [1], [0, 0, 1, 1], [], []>} : vector<16x64xbf16>, vector<64x32xbf16>, vector<16x32xf32> -> vector<16x32xf32>
    %83 = arith.addf %54, %82 : vector<16x32xf32>
    %c0_36 = arith.constant 0 : index
    %c0_37 = arith.constant 0 : index
    %84 = vector.load %arg12[%c0_36, %c0_37] : memref<16x32xf32, #tpu.memory_space<vmem>>, vector<16x32xf32>
    tpu.vector_store %arg12[%c0_36, %c0_37], %83 {strides = array<i32>} : memref<16x32xf32, #tpu.memory_space<vmem>>, vector<16x32xf32>,
    return
  }
  func.func @transform_0(%arg0: i32) -> (i32, i32) {
    %c0_i32 = arith.constant 0 : i32
    %c0_i32_0 = arith.constant 0 : i32
    %c0_i32_1 = arith.constant 0 : i32
    return %c0_i32, %c0_i32_0 : i32, i32
  }
  func.func @transform_1(%arg0: i32) -> (i32, i32) {
    %c0_i32 = arith.constant 0 : i32
    %c0_i32_0 = arith.constant 0 : i32
    %c0_i32_1 = arith.constant 0 : i32
    return %c0_i32, %c0_i32_0 : i32, i32
  }
  func.func @transform_2(%arg0: i32) -> (i32, i32) {
    %c0_i32 = arith.constant 0 : i32
    %c0_i32_0 = arith.constant 0 : i32
    %c0_i32_1 = arith.constant 0 : i32
    return %c0_i32, %c0_i32_0 : i32, i32
  }
  func.func @transform_3(%arg0: i32) -> (i32, i32) {
    %c0_i32 = arith.constant 0 : i32
    %c0_i32_0 = arith.constant 0 : i32
    %c0_i32_1 = arith.constant 0 : i32
    return %c0_i32, %c0_i32_0 : i32, i32
  }
  func.func @transform_4(%arg0: i32) -> (i32, i32) {
    %c0_i32 = arith.constant 0 : i32
    %c0_i32_0 = arith.constant 0 : i32
    %c0_i32_1 = arith.constant 0 : i32
    return %c0_i32, %c0_i32_0 : i32, i32
  }
  func.func @transform_5(%arg0: i32) -> (i32, i32) {
    %c0_i32 = arith.constant 0 : i32
    %c0_i32_0 = arith.constant 0 : i32
    %c0_i32_1 = arith.constant 0 : i32
    return %c0_i32, %c0_i32_0 : i32, i32
  }
  func.func @transform_6(%arg0: i32) -> (i32, i32) {
    %c0_i32 = arith.constant 0 : i32
    %c0_i32_0 = arith.constant 0 : i32
    %c0_i32_1 = arith.constant 0 : i32
    return %c0_i32, %c0_i32_0 : i32, i32
  }
  func.func @transform_7(%arg0: i32) -> (i32, i32) {
    %c0_i32 = arith.constant 0 : i32
    %c0_i32_0 = arith.constant 0 : i32
    %c0_i32_1 = arith.constant 0 : i32
    return %c0_i32, %c0_i32_0 : i32, i32
  }
  func.func @transform_8(%arg0: i32) -> (i32, i32) {
    %c0_i32 = arith.constant 0 : i32
    %c0_i32_0 = arith.constant 0 : i32
    %c0_i32_1 = arith.constant 0 : i32
    return %c0_i32, %c0_i32_0 : i32, i32
  }
  func.func @transform_9(%arg0: i32) -> (i32, i32) {
    %c0_i32 = arith.constant 0 : i32
    %c0_i32_0 = arith.constant 0 : i32
    %c0_i32_1 = arith.constant 0 : i32
    return %c0_i32, %c0_i32_0 : i32, i32
  }
  func.func @transform_10(%arg0: i32) -> (i32, i32) {
    %c0_i32 = arith.constant 0 : i32
    %c0_i32_0 = arith.constant 0 : i32
    %c0_i32_1 = arith.constant 0 : i32
    return %c0_i32, %c0_i32_0 : i32, i32
  }
  func.func @transform_11(%arg0: i32) -> (i32, i32) {
    %c0_i32 = arith.constant 0 : i32
    %c0_i32_0 = arith.constant 0 : i32
    %c0_i32_1 = arith.constant 0 : i32
    return %c0_i32, %c0_i32_0 : i32, i32
  }
}

</mosaic_0001>

<bundles_post_ra>
// kernel: decoder_layer.1
= control target key start
LH: loop header
LB: loop body
LE: loop exit
PB: predicated region body
PF: predicated region fallthrough
CT: control target
= control target key end

     0   :  { %16 = vsyncpa [#allocation3], 0  ;;  %s1229_s0 = inlined_call_operand.vmem [shape: f32[16,32], index: 0, kind: input, shape index: {}]   ;;  %s1230_s1 = inlined_call_operand.vmem [shape: f32[16,64], index: 1, kind: input, shape index: {}]   ;;  %s1231_s2 = inlined_call_operand.vmem [shape: f32[16,64], index: 2, kind: input, shape index: {}]   ;;  %s1232_s3 = inlined_call_operand.vmem [shape: f32[16,64], index: 3, kind: input, shape index: {}]   ;;  %s1233_s4 = inlined_call_operand.vmem [shape: f32[64,32], index: 4, kind: input, shape index: {}]   ;;  %s1234_s5 = inlined_call_operand.hbm [shape: f32[1,32], index: 5, kind: input, shape index: {}]   ;;  %s1235_s6 = inlined_call_operand.hbm [shape: f32[1,32], index: 6, kind: input, shape index: {}]   ;;  %s1236_s7 = inlined_call_operand.vmem [shape: bf16[32,160], index: 7, kind: input, shape index: {}]   ;;  %s1237_s8 = inlined_call_operand.vmem [shape: bf16[32,32], index: 8, kind: input, shape index: {}]   ;;  %s1238_s9 = inlined_call_operand.vmem [shape: bf16[32,128], index: 9, kind: input, shape index: {}]   ;;  %s1239_s10 = inlined_call_operand.vmem [shape: bf16[64,32], index: 10, kind: input, shape index: {}]   ;;  %s1240_s11 = inlined_call_operand.hbm [shape: f32[16,32], index: 11, kind: output, shape index: {}]  }
   0x1   :  { %17 = vsyncpa [#allocation6], 0 }
   0x2   :  { %18 = vsyncpa [#allocation4], 0  ;;  %s936_s17 = smov [#allocation2]   ;;  %s937_s19 = smov [#allocation5]  }
   0x3   :  { %s35_s18 = sshll.u32 %s936_s17, 4  ;;  %s45_s20 = sshll.u32 %s937_s19, 4  ;;  %s36_s18 = int_to_ptr.vmem [resolvable:$true] %s35_s18  ;;  %s46_s20 = int_to_ptr.vmem [resolvable:$true] %s45_s20 }
   0x4   :  { %s878_s21 = scalar_lea.vmem %s36_s18, 16  ;;  %s882_s22 = scalar_lea.vmem %s36_s18, 32 }
   0x5   :  { %p879_p0 = scmp.ne.s32.totalorder %s36_s18, %s878_s21  ;;  %p883_p1 = scmp.lt.s32.totalorder %s36_s18, %s36_s18 }
   0x6   :  { %p884_p2 = scmp.lt.s32.totalorder %s882_s22, %s878_s21 }
   0x8   :  { %p885_p3 = por %p884_p2, %p883_p1 }
   0xa   :  { %p886_p4 = pnand %p885_p3, %p879_p0 }
   0xc   :  { %889 = shalt.err (!%p886_p4)
}
   0xd   :  { %38 = dma.hbm_to_vmem [thread:$0]  %s1234_s5, 16, %s36_s18, [#allocation3]  }
   0xe   :  { %s898_s25 = scalar_lea.vmem %s46_s20, 16  ;;  %s902_s26 = scalar_lea.vmem %s46_s20, 32 }
   0xf   :  { %p899_p5 = scmp.ne.s32.totalorder %s46_s20, %s898_s25  ;;  %p903_p6 = scmp.lt.s32.totalorder %s46_s20, %s46_s20 }
  0x10   :  { %p904_p7 = scmp.lt.s32.totalorder %s902_s26, %s898_s25 }
  0x12   :  { %p905_p8 = por %p904_p7, %p903_p6 }
  0x14   :  { %p906_p9 = pnand %p905_p8, %p899_p5 }
  0x16   :  { %909 = shalt.err (!%p906_p9)
}
  0x17   :  { %48 = dma.hbm_to_vmem [thread:$0]  %s1235_s6, 16, %s46_s20, [#allocation6]  }
  0x18   :  { %930 = dma.done.wait [#allocation3], 16  }
  0x19   :  { %931 = vsyncadd [#allocation3], 4294967280 }
  0x1a   :  { %932 = dma.done.wait [#allocation6], 16  }
  0x1b   :  { %933 = vsyncadd [#allocation6], 4294967280  ;;  %v1016_v0 = vld [vmem:[%s1229_s0] sm:$0xff]  ;;  %vm68_vm0 = vcmask 261120   ;;  %v1021_v1 = vld [vmem:[%s1229_s0 + $0x8] sm:$0xff]  ;;  %v938_v9 = vmov 0  }
  0x1c   :  { %v66_v2 = vmul.f32 %v1016_v0, %v1016_v0  ;;  %v67_v3 = vmul.f32 %v1021_v1, %v1021_v1  ;;  %v832_v6 = vld [vmem:[%s1236_s7 + $0x14] ss:$8 sps:$4 sm:$0xff]   ;;  %v834_v7 = vld [vmem:[%s1236_s7 + $0x10] ss:$8 sps:$4 sm:$0xff]   ;;  %v835_v8 = vld [vmem:[%s1236_s7 + $0x4] ss:$8 sps:$4 sm:$0xff]   ;;  %153 = vmatprep.mubr.bf16.mxu0 %v938_v9 }
  0x1d   :  { %133 = vmatprep.subr.bf16.mxu0 %v832_v6  ;;  %v837_v10 = vld [vmem:[%s1236_s7] ss:$8 sps:$4 sm:$0xff]   ;;  %s939_s21 = smov 64   ;;  %v1055_v27 = vld [vmem:[%s1233_s4 + $0x30] sm:$0xff]  ;;  %s940_s24 = smov 32   ;;  %v941_v28 = vmov 0.0  }
  0x1e   :  { %v69_v4 = vsel %vm68_vm0, %v66_v2, 0.0  ;;  %v72_v5 = vsel %vm68_vm0, %v67_v3, 0.0  ;;  %134 = vmatpush1.bf16.msra.mxu0 %v834_v7  ;;  %v168_v11 = vld [vmem:[%s1232_s3] sm:$0xff]  ;;  %v169_v12 = vld [vmem:[%s1232_s3 + $0x8] sm:$0xff]  ;;  %757 = vmatprep.subr.bf16.mxu1 %v941_v28  ;;  %v1065_v35 = vld [vmem:[%s1233_s4 + $0x18] sm:$0xff]  ;;  %s942_s20 = smov 96  }
  0x1f   :  { %70 = vadd.xlane.f32.xlu0 %v69_v4  ;;  %135 = vmatprep.subr.bf16.mxu0 %v835_v8  ;;  %v708_v22 = vld [vmem:[#allocation2] ss:$0 sm:$0xff]  ;;  %v1070_v37 = vld [vmem:[%s1233_s4 + $0x38] sm:$0xff]  ;;  %v1075_v39 = vld [vmem:[%s1233_s4 + $0x28] sm:$0xff]  ;;  %vm943_vm1 = vmmov 0   ;;  %vm329_vm2 = vcmask 523264  }
  0x20   :  { %172 = vrot.lane.b32.xlu1 %v168_v11, %s939_s21  ;;  %v1085_v42 = vld [vmem:[%s1233_s4 + $0x20] sm:$0xff]  ;;  %v1091_v44 = vld [vmem:[%s1233_s4 + $0x8] sm:$0xff]  ;;  %v1101_v47 = vld [vmem:[%s1233_s4 + $0x10] sm:$0xff]  ;;  %765 = vmatprep.mubr.msk.bf16.mxu1 %vm943_vm1, %v941_v28 }
  0x21   :  { %v1111_v51 = vld [vmem:[%s1233_s4] sm:$0xff]  ;;  %v165_v58 = vld [vmem:[%s1231_s2 + $0x8] sm:$0xff] }
  0x22   :  { %136 = vmatpush1.bf16.msra.mxu0 %v837_v10  ;;  %v164_v57 = vld [vmem:[%s1231_s2] sm:$0xff] }
  0x23   :  { %73 = vadd.xlane.f32.xlu0 %v72_v5  ;;  %769 = vmatprep.subr.bf16.mxu0 %v941_v28 }
  0x24   :  { %174 = vrot.lane.b32.xlu1 %v169_v12, %s939_s21 }
  0x28   :  { %218 = vrot.lane.b32.xlu1 %v1055_v27, %s940_s24 }
  0x92   :  { %v173_v29 = vpop.permute.xlu1 %172 }
  0x96   :  { %v175_v33 = vpop.permute.xlu1 %174 }
  0x9a   :  { %v219_v56 = vpop.permute.xlu1 %218 }
  0xa8   :  { %v71_v13 = vpop.xlane.xlu0 %70 }
  0xa9   :  { %v76_v14 = vmul.f32 0.03125, %v71_v13 }
  0xab   :  { %v78_v15 = vadd.f32 1e-06, %v76_v14 }
  0xac   :  { %v74_v16 = vpop.xlane.xlu0 %73 }
  0xad   :  { %846 = vrsqrt.f32 %v78_v15  ;;  %v77_v17 = vmul.f32 0.03125, %v74_v16 }
  0xaf   :  { %v79_v18 = vadd.f32 1e-06, %v77_v17 }
  0xb1   :  { %848 = vrsqrt.f32 %v79_v18 }
  0xba   :  { %v847_v19 = vpop.eup %846 }
  0xbb   :  { %v82_v20 = vmul.f32 %v847_v19, %v1016_v0 }
  0xbd   :  { %v91_v24 = vmul.f32 %v708_v22, %v82_v20 }
  0xbe   :  { %v849_v21 = vpop.eup %848 }
  0xbf   :  { %v83_v23 = vmul.f32 %v849_v21, %v1021_v1 }
  0xc1   :  { %v92_v25 = vmul.f32 %v708_v22, %v83_v23 }
  0xc3   :  { %v93_v26 = vpack.c.bf16 %v92_v25, %v91_v24 }
  0xc5   :  { %713 = vmatmul.mubr.msk.bf16.vlgmr.msra.gmra.mxu0 %vm68_vm0, %v93_v26 }
  0xc6   :  { %777 = vmatprep.mubr.msk.bf16.mxu0 %vm943_vm1, %v941_v28 }
 0x185   :  { %v155_v30 = vpop.f32.mrf.mxu0 }
 0x186   :  { %v178_v31 = vmul.f32 %v173_v29, %v155_v30  ;;  %v166_v60 = vmul.f32 %v164_v57, %v155_v30 }
 0x187   :  { %v157_v32 = vpop.f32.mrf.mxu0 }
 0x188   :  { %182 = vrot.lane.b32.xlu0 %v178_v31, %s939_s21  ;;  %v248_v40 = vmul.f32 %v1055_v27, %v157_v32  ;;  %v246_v46 = vmul.f32 %v1085_v42, %v157_v32  ;;  %v244_v50 = vmul.f32 %v1101_v47, %v157_v32  ;;  %v242_v54 = vmul.f32 %v1111_v51, %v157_v32 }
 0x189   :  { %v159_v34 = vpop.f32.mrf.mxu0 }
 0x18a   :  { %v179_v36 = vmul.f32 %v175_v33, %v159_v34  ;;  %v167_v61 = vmul.f32 %v165_v58, %v159_v34  ;;  %v325_v34 = vld [vmem:[%s1230_s1] sm:$0xff] }
 0x18b   :  { %v161_v38 = vpop.f32.mrf.mxu0 }
 0x18c   :  { %212 = vrot.lane.b32.xlu0 %v1065_v35, %s940_s24  ;;  %184 = vrot.lane.b32.xlu1 %v179_v36, %s939_s21  ;;  %v249_v41 = vmul.f32 %v1070_v37, %v161_v38  ;;  %v247_v43 = vmul.f32 %v1075_v39, %v161_v38  ;;  %v245_v48 = vmul.f32 %v1065_v35, %v161_v38 }
 0x18d   :  { %v243_v53 = vmul.f32 %v1091_v44, %v161_v38 }
 0x18e   :  { %v253_v45 = vpack.c.bf16 %v249_v41, %v248_v40  ;;  %v252_v49 = vpack.c.bf16 %v247_v43, %v246_v46  ;;  %v251_v52 = vpack.c.bf16 %v245_v48, %v244_v50  ;;  %v326_v43 = vld [vmem:[%s1230_s1 + $0x8] sm:$0xff] }
 0x18f   :  { %v250_v55 = vpack.c.bf16 %v243_v53, %v242_v54 }
 0x190   :  { %208 = vrot.lane.b32.xlu0 %v1091_v44, %s940_s24  ;;  %220 = vrot.lane.b32.xlu1 %v1070_v37, %s940_s24 }
 0x191   :  { %770 = vmatpush3.bf16.msra.mxu0 %v253_v45 }
 0x192   :  { %771 = vmatprep.subr.bf16.mxu0 %v941_v28 }
 0x194   :  { %214 = vrot.lane.b32.xlu1 %v1085_v42, %s940_s24 }
 0x195   :  { %772 = vmatpush3.bf16.msra.mxu0 %v252_v49 }
 0x196   :  { %773 = vmatprep.subr.bf16.mxu0 %v941_v28 }
 0x198   :  { %216 = vrot.lane.b32.xlu1 %v1075_v39, %s940_s24 }
 0x199   :  { %774 = vmatpush3.bf16.msra.mxu0 %v251_v52 }
 0x19a   :  { %775 = vmatprep.subr.bf16.mxu0 %v941_v28 }
 0x19c   :  { %210 = vrot.lane.b32.xlu1 %v1101_v47, %s940_s24 }
 0x19d   :  { %776 = vmatpush3.bf16.msra.mxu0 %v250_v55 }
 0x19e   :  { %781 = vmatprep.subr.bf16.mxu0 %v941_v28 }
 0x1a0   :  { %206 = vrot.lane.b32.xlu1 %v1111_v51, %s940_s24 }
 0x1fa   :  { %v183_v59 = vpop.permute.xlu0 %182 }
 0x1fb   :  { %v188_v63 = vadd.f32 %v183_v59, %v166_v60  ;;  %v390_v60 = vpack.c.bf16 %v1070_v37, %v1055_v27  ;;  %v387_v27 = vpack.c.bf16 %v1091_v44, %v1111_v51  ;;  %v839_v37 = vld [vmem:[%s1237_s8] sm:$0xff]  }
 0x1fd   :  { %v236_v5 = vmul.f32 %v219_v56, %v188_v63 }
 0x1fe   :  { %v185_v62 = vpop.permute.xlu1 %184  ;;  %v213_v9 = vpop.permute.xlu0 %212 }
 0x1ff   :  { %v189_v2 = vadd.f32 %v185_v62, %v167_v61  ;;  %v389_v62 = vpack.c.bf16 %v1075_v39, %v1085_v42 }
 0x201   :  { %v254_v3 = vpack.c.bf16 %v189_v2, %v188_v63  ;;  %v233_v16 = vmul.f32 %v213_v9, %v189_v2 }
 0x202   :  { %v221_v4 = vpop.permute.xlu1 %220  ;;  %v209_v17 = vpop.permute.xlu0 %208 }
 0x203   :  { %v237_v6 = vmul.f32 %v221_v4, %v189_v2  ;;  %v231_v20 = vmul.f32 %v209_v17, %v189_v2 }
 0x205   :  { %v241_v7 = vpack.c.bf16 %v237_v6, %v236_v5 }
 0x206   :  { %v215_v8 = vpop.permute.xlu1 %214 }
 0x207   :  { %265 = vrot.lane.b32.xlu1 %v241_v7, %s942_s20  ;;  %v234_v11 = vmul.f32 %v215_v8, %v188_v63 }
 0x20a   :  { %v217_v10 = vpop.permute.xlu1 %216 }
 0x20b   :  { %v235_v12 = vmul.f32 %v217_v10, %v189_v2 }
 0x20d   :  { %v240_v13 = vpack.c.bf16 %v235_v12, %v234_v11 }
 0x20e   :  { %v211_v14 = vpop.permute.xlu1 %210 }
 0x20f   :  { %v232_v15 = vmul.f32 %v211_v14, %v188_v63  ;;  %263 = vrot.lane.b32.xlu0 %v240_v13, %s942_s20 }
 0x211   :  { %v239_v18 = vpack.c.bf16 %v233_v16, %v232_v15 }
 0x212   :  { %v207_v19 = vpop.permute.xlu1 %206 }
 0x213   :  { %v230_v21 = vmul.f32 %v207_v19, %v188_v63  ;;  %261 = vrot.lane.b32.xlu1 %v239_v18, %s942_s20  ;;  %v388_v63 = vpack.c.bf16 %v1065_v35, %v1101_v47  ;;  %v838_v35 = vld [vmem:[%s1237_s8 + $0x8] sm:$0xff]  }
 0x215   :  { %v238_v22 = vpack.c.bf16 %v231_v20, %v230_v21 }
 0x217   :  { %259 = vrot.lane.b32.xlu0 %v238_v22, %s942_s20 }
 0x279   :  { %v266_v23 = vpop.permute.xlu1 %265 }
 0x27a   :  { %v280_v24 = vsel %vm68_vm0, %v266_v23, 0 }
 0x27b   :  { %758 = vmatpush3.bf16.xpose.msra.mxu1 %v280_v24 }
 0x27c   :  { %759 = vmatprep.subr.bf16.mxu1 %v941_v28 }
 0x281   :  { %v264_v25 = vpop.permute.xlu0 %263 }
 0x282   :  { %v277_v26 = vsel %vm68_vm0, %v264_v25, 0 }
 0x283   :  { %760 = vmatpush3.bf16.xpose.msra.mxu1 %v277_v26 }
 0x284   :  { %761 = vmatprep.subr.bf16.mxu1 %v941_v28 }
 0x285   :  { %v262_v29 = vpop.permute.xlu1 %261 }
 0x286   :  { %v274_v30 = vsel %vm68_vm0, %v262_v29, 0 }
 0x289   :  { %v260_v31 = vpop.permute.xlu0 %259 }
 0x28a   :  { %v271_v32 = vsel %vm68_vm0, %v260_v31, 0  ;;  %v720_v31 = vld [vmem:[#allocation5] ss:$0 sm:$0xff] }
 0x28b   :  { %762 = vmatpush3.bf16.xpose.msra.mxu1 %v274_v30 }
 0x28c   :  { %763 = vmatprep.subr.bf16.mxu1 %v941_v28 }
 0x293   :  { %764 = vmatpush3.bf16.xpose.msra.mxu1 %v271_v32 }
 0x294   :  { %793 = vmatprep.subr.bf16.mxu1 %v941_v28 }
 0x29a   :  { %766 = vmatmul.mubr.msk.bf16.vlgmr.msra.gmra.mxu1 %vm68_vm0, %v254_v3 }
 0x29b   :  { %797 = vmatprep.mubr.msk.bf16.mxu1 %vm943_vm1, %v941_v28  ;;  %794 = vmatpush3.bf16.msra.mxu1 %v838_v35 }
 0x29c   :  { %795 = vmatprep.subr.bf16.mxu1 %v941_v28 }
 0x29f   :  { %796 = vmatpush3.bf16.msra.mxu1 %v839_v37 }
 0x2a0   :  { %809 = vmatprep.subr.bf16.mxu1 %v941_v28 }
 0x35a   :  { %v316_v33 = vpop.f32.mrf.mxu1 }
 0x35b   :  { %v323_v36 = vmul.f32 0.35355338, %v316_v33 }
 0x35c   :  { %v767_v38 = vpop.f32.mrf.mxu1 }
 0x35d   :  { %v327_v40 = vadd.f32 %v325_v34, %v323_v36  ;;  %v842_v38 = vld [vmem:[%s1239_s10 + $0x18] sm:$0xff]  }
 0x35e   :  { %v319_v41 = vpop.f32.mrf.mxu1 }
 0x35f   :  { %v324_v45 = vmul.f32 0.35355338, %v319_v41  ;;  %v330_v46 = vsel %vm329_vm2, %v327_v40, -inf  ;;  %v844_v41 = vld [vmem:[%s1239_s10 + $0x8] sm:$0xff]  }
 0x360   :  { %331 = vmax.xlane.f32.xlu1 %v330_v46  ;;  %v768_v48 = vpop.f32.mrf.mxu1 }
 0x361   :  { %v328_v49 = vadd.f32 %v326_v43, %v324_v45  ;;  %v845_v43 = vld [vmem:[%s1239_s10] sm:$0xff]  }
 0x363   :  { %v333_v50 = vsel %vm329_vm2, %v328_v49, -inf }
 0x364   :  { %334 = vmax.xlane.f32.xlu0 %v333_v50 }
 0x3e9   :  { %v332_v52 = vpop.xlane.xlu1 %331 }
 0x3ea   :  { %v336_v53 = vsub.f32 %v327_v40, %v332_v52  ;;  %v843_v40 = vld [vmem:[%s1239_s10 + $0x10] sm:$0xff]   ;;  %s944_s10 = smov [#allocation7]  }
 0x3ec   :  { %v338_v54 = vmul.f32 1.442695, %v336_v53 }
 0x3ed   :  { %v335_v55 = vpop.xlane.xlu0 %334 }
 0x3ee   :  { %v337_v56 = vsub.f32 %v328_v49, %v335_v55  ;;  %850 = vpow2.f32 %v338_v54 }
 0x3f0   :  { %v340_v57 = vmul.f32 1.442695, %v337_v56 }
 0x3f2   :  { %852 = vpow2.f32 %v340_v57 }
 0x3fb   :  { %v851_v58 = vpop.eup %850 }
 0x3ff   :  { %v853_v59 = vpop.eup %852 }
 0x400   :  { %v342_v61 = vpack.c.bf16 %v853_v59, %v851_v58 }
 0x402   :  { %778 = vmatmul.mubr.msk.bf16.vlgmr.msra.gmra.mxu0 %vm329_vm2, %v342_v61 }
 0x403   :  { %782 = vmatpush3.bf16.msra.mxu0 %v390_v60  ;;  %789 = vmatprep.mubr.msk.bf16.mxu0 %vm943_vm1, %v941_v28 }
 0x404   :  { %783 = vmatprep.subr.bf16.mxu0 %v941_v28 }
 0x407   :  { %784 = vmatpush3.bf16.msra.mxu0 %v389_v62 }
 0x408   :  { %785 = vmatprep.subr.bf16.mxu0 %v941_v28 }
 0x40b   :  { %786 = vmatpush3.bf16.msra.mxu0 %v388_v63 }
 0x40c   :  { %787 = vmatprep.subr.bf16.mxu0 %v941_v28 }
 0x40f   :  { %788 = vmatpush3.bf16.msra.mxu0 %v387_v27 }
 0x410   :  { %801 = vmatprep.subr.bf16.mxu0 %v941_v28 }
 0x412   :  { %790 = vmatmul.mubr.msk.bf16.vlgmr.msra.gmra.mxu0 %vm329_vm2, %v342_v61 }
 0x413   :  { %805 = vmatprep.mubr.msk.bf16.mxu0 %vm943_vm1, %v941_v28 }
 0x4c2   :  { %v380_v39 = vpop.f32.mrf.mxu0 }
 0x4c4   :  { %v779_v42 = vpop.f32.mrf.mxu0 }
 0x4c6   :  { %v383_v44 = vpop.f32.mrf.mxu0 }
 0x4c8   :  { %v780_v47 = vpop.f32.mrf.mxu0 }
 0x4d2   :  { %v425_v51 = vpop.f32.mrf.mxu0 }
 0x4d3   :  { %854 = vrcp.f32 %v425_v51 }
 0x4d4   :  { %v791_v2 = vpop.f32.mrf.mxu0 }
 0x4d6   :  { %v428_v3 = vpop.f32.mrf.mxu0 }
 0x4d7   :  { %856 = vrcp.f32 %v428_v3 }
 0x4d8   :  { %v792_v4 = vpop.f32.mrf.mxu0 }
 0x4e0   :  { %v855_v5 = vpop.eup %854 }
 0x4e1   :  { %v434_v7 = vmul.f32 %v855_v5, %v380_v39 }
 0x4e4   :  { %v857_v6 = vpop.eup %856 }
 0x4e5   :  { %v435_v8 = vmul.f32 %v857_v6, %v383_v44 }
 0x4e7   :  { %v436_v9 = vpack.c.bf16 %v435_v8, %v434_v7 }
 0x4e9   :  { %798 = vmatmul.mubr.msk.bf16.vlgmr.msra.gmra.mxu1 %vm68_vm0, %v436_v9 }
 0x4ea   :  { %817 = vmatprep.mubr.msk.bf16.mxu1 %vm943_vm1, %v941_v28  ;;  %810 = vmatpush3.bf16.msra.mxu1 %v842_v38 }
 0x4eb   :  { %811 = vmatprep.subr.bf16.mxu1 %v941_v28 }
 0x4ee   :  { %812 = vmatpush3.bf16.msra.mxu1 %v843_v40 }
 0x4ef   :  { %813 = vmatprep.subr.bf16.mxu1 %v941_v28 }
 0x4f2   :  { %814 = vmatpush3.bf16.msra.mxu1 %v844_v41 }
 0x4f3   :  { %815 = vmatprep.subr.bf16.mxu1 %v941_v28 }
 0x4f6   :  { %816 = vmatpush3.bf16.msra.mxu1 %v845_v43 }
 0x5a9   :  { %v490_v10 = vpop.f32.mrf.mxu1 }
 0x5aa   :  { %v1183_v11 = vadd.f32 %v490_v10, %v1016_v0  ;;  %v840_v0 = vld [vmem:[%s1238_s9 + $0x8] sm:$0xff]  }
 0x5ab   :  { %v799_v12 = vpop.f32.mrf.mxu1  ;;  %802 = vmatpush3.bf16.msra.mxu0 %v840_v0 }
 0x5ac   :  { %v499_v13 = vmul.f32 %v1183_v11, %v1183_v11  ;;  %803 = vmatprep.subr.bf16.mxu0 %v941_v28 }
 0x5ad   :  { %v493_v14 = vpop.f32.mrf.mxu1 }
 0x5ae   :  { %v1188_v15 = vadd.f32 %v493_v14, %v1021_v1  ;;  %v501_v16 = vsel %vm68_vm0, %v499_v13, 0.0  ;;  %v841_v1 = vld [vmem:[%s1238_s9] sm:$0xff]  }
 0x5af   :  { %502 = vadd.xlane.f32.xlu0 %v501_v16  ;;  %v800_v17 = vpop.f32.mrf.mxu1  ;;  %804 = vmatpush3.bf16.msra.mxu0 %v841_v1 }
 0x5b0   :  { %v500_v18 = vmul.f32 %v1188_v15, %v1188_v15 }
 0x5b2   :  { %v504_v19 = vsel %vm68_vm0, %v500_v18, 0.0 }
 0x5b3   :  { %505 = vadd.xlane.f32.xlu1 %v504_v19 }
 0x638   :  { %v503_v20 = vpop.xlane.xlu0 %502 }
 0x639   :  { %v507_v21 = vmul.f32 0.03125, %v503_v20 }
 0x63b   :  { %v509_v22 = vadd.f32 1e-06, %v507_v21 }
 0x63c   :  { %v506_v23 = vpop.xlane.xlu1 %505 }
 0x63d   :  { %858 = vrsqrt.f32 %v509_v22  ;;  %v508_v24 = vmul.f32 0.03125, %v506_v23 }
 0x63f   :  { %v510_v25 = vadd.f32 1e-06, %v508_v24 }
 0x641   :  { %860 = vrsqrt.f32 %v510_v25 }
 0x64a   :  { %v859_v26 = vpop.eup %858 }
 0x64b   :  { %v513_v29 = vmul.f32 %v859_v26, %v1183_v11 }
 0x64d   :  { %v522_v33 = vmul.f32 %v720_v31, %v513_v29 }
 0x64e   :  { %v861_v30 = vpop.eup %860 }
 0x64f   :  { %v514_v32 = vmul.f32 %v861_v30, %v1188_v15 }
 0x651   :  { %v523_v34 = vmul.f32 %v720_v31, %v514_v32 }
 0x653   :  { %v524_v36 = vpack.c.bf16 %v523_v34, %v522_v33 }
 0x655   :  { %806 = vmatmul.mubr.msk.bf16.vlgmr.msra.gmra.mxu0 %vm68_vm0, %v524_v36 }
 0x715   :  { %v578_v45 = vpop.f32.mrf.mxu0 }
 0x716   :  { %601 = vrot.lane.b32.xlu0 %v578_v45, %s939_s21  ;;  %v724_v50 = vmul.f32 -1.442695, %v578_v45 }
 0x717   :  { %v807_v46 = vpop.f32.mrf.mxu0 }
 0x718   :  { %862 = vpow2.f32 %v724_v50 }
 0x719   :  { %v581_v48 = vpop.f32.mrf.mxu0 }
 0x71a   :  { %603 = vrot.lane.b32.xlu1 %v581_v48, %s939_s21  ;;  %v725_v52 = vmul.f32 -1.442695, %v581_v48  ;;  %s695_s21 = sshll.u32 %s944_s10, 4  ;;  %s696_s21 = int_to_ptr.vmem [resolvable:$true] %s695_s21 }
 0x71b   :  { %v808_v49 = vpop.f32.mrf.mxu0  ;;  %s910_s15 = scalar_lea.vmem %s696_s21, 256  ;;  %p915_p11 = scmp.lt.s32.totalorder %s696_s21, %s696_s21 }
 0x71c   :  { %864 = vpow2.f32 %v725_v52  ;;  %p911_p10 = scmp.ne.s32.totalorder %s696_s21, %s910_s15  ;;  %p916_p12 = scmp.lt.s32.totalorder %s910_s15, %s910_s15 }
 0x71e   :  { %p917_p13 = por %p916_p12, %p915_p11 }
 0x720   :  { %p918_p0 = pnand %p917_p13, %p911_p10 }
 0x725   :  { %v863_v53 = vpop.eup %862 }
 0x726   :  { %v591_v28 = vadd.f32 1.0, %v863_v53 }
 0x728   :  { %866 = vrcp.f32 %v591_v28 }
 0x729   :  { %v865_v54 = vpop.eup %864 }
 0x72a   :  { %v592_v55 = vadd.f32 1.0, %v865_v54 }
 0x72c   :  { %868 = vrcp.f32 %v592_v55 }
 0x735   :  { %v867_v56 = vpop.eup %866 }
 0x736   :  { %v597_v59 = vmul.f32 %v867_v56, %v578_v45 }
 0x739   :  { %v869_v57 = vpop.eup %868 }
 0x73a   :  { %v598_v60 = vmul.f32 %v869_v57, %v581_v48 }
 0x788   :  { %v602_v58 = vpop.permute.xlu0 %601 }
 0x789   :  { %v607_v62 = vmul.f32 %v602_v58, %v597_v59 }
 0x78c   :  { %v604_v61 = vpop.permute.xlu1 %603 }
 0x78d   :  { %v608_v63 = vmul.f32 %v604_v61, %v598_v60 }
 0x78f   :  { %v609_v27 = vpack.c.bf16 %v608_v63, %v607_v62 }
 0x791   :  { %818 = vmatmul.mubr.msk.bf16.vlgmr.msra.gmra.mxu1 %vm329_vm2, %v609_v27 }
 0x851   :  { %v679_v35 = vpop.f32.mrf.mxu1 }
 0x852   :  { %v686_v37 = vadd.f32 %v679_v35, %v1183_v11 }
 0x853   :  { %v819_v39 = vpop.f32.mrf.mxu1 }
 0x854   :  { %688 = vst.msk [vmem:[#allocation7] sm:$0xff] %vm68_vm0, %v686_v37 }
 0x855   :  { %v682_v42 = vpop.f32.mrf.mxu1 }
 0x856   :  { %v687_v44 = vadd.f32 %v682_v42, %v1188_v15 }
 0x857   :  { %v820_v47 = vpop.f32.mrf.mxu1 }
 0x858   :  { %689 = vst.msk [vmem:[#allocation7 + $0x8] sm:$0xff] %vm68_vm0, %v687_v44 }
 0x859   :  { %921 = shalt.err (!%p918_p0)
}
 0x85a   :  { %s945_s0 = smov 128   ;;  %s946_s16 = smov 8  }
 0x85b   :  { %701 = dma.vmem_to_hbm [thread:$0]  %s696_s21, 256, %s1240_s11, [#allocation4], %s945_s0, %s945_s0, %s946_s16  }
 0x85c   :  { %934 = dma.done.wait [#allocation4], 256  }
 0x85d   :  { %935 = vsyncadd [#allocation4], 4294967040 }
 0x85e   :  { %705 = vsyncpa [#allocation3], 1 }
 0x85f   :  { %706 = vsyncpa [#allocation6], 1 }
 0x860   :  { %707 = vsyncpa [#allocation4], 1 }

</bundles_post_ra>
